<compile_context>
chip_gen: v7x
topology: tpu7x:2x2x1
jax: 0.10.0
libtpu: 0.0.40
codegen_flags: <defaults>
</compile_context>

<pallas_src>
import jax
import jax.numpy as jnp
import numpy as np
from jax import lax
from jax.experimental import pallas as pl
from jax.experimental.pallas import tpu as pltpu

EPS = 1e-5
LANE = 128


def _round_up(n, m):
    return ((n + m - 1) // m) * m


def basic_block_kernel(x_ref, w1_ref, g1_ref, b1_ref, w2_ref, g2_ref, b2_ref,
                       mfirst_ref, mlast_ref, out_ref):
    # x_ref      : (NL, C)   f32 channels-last activations, C padded to a multiple of 128.
    #              Also the residual (identity) branch — loaded once.
    # w1_ref/w2_ref : (3, C, C) bf16 conv taps; tap k multiplies x[l + k - 1].
    # g*/b*      : (1, C)    f32 BN gamma / beta (zero on padded channels).
    # mfirst_ref : (NL, 1)   f32 mask, 0.0 at the first position of each sample, else 1.0.
    # mlast_ref  : (NL, 1)   f32 mask, 0.0 at the last  position of each sample, else 1.0.
    # out_ref    : (NL, C)   f32
    NL, C = x_ref.shape
    inv_nl = 1.0 / float(NL)

    x = x_ref[...]                       # f32, reused for the residual add
    m_first = mfirst_ref[...]
    m_last = mlast_ref[...]

    def conv3(h_f32, w_ref):
        """k=3, pad=1 conv: 3 lane-dense MXU matmuls; off-center taps are sublane-rolled
        (pltpu.roll follows jnp.roll: out[i] = in[i - shift]) and boundary-masked."""
        hb = h_f32.astype(jnp.bfloat16)
        acc = jnp.dot(hb, w_ref[1], preferred_element_type=jnp.float32)        # center tap
        t0 = jnp.dot(hb, w_ref[0], preferred_element_type=jnp.float32)         # needs h[l-1]
        acc = acc + pltpu.roll(t0, shift=1, axis=0) * m_first
        t2 = jnp.dot(hb, w_ref[2], preferred_element_type=jnp.float32)         # needs h[l+1]
        acc = acc + pltpu.roll(t2, shift=NL - 1, axis=0) * m_last
        return acc

    def bn_fused(acc, g_ref, b_ref):
        """Training-mode BatchNorm1d: single stats pass, folded to one FMA per element."""
        s = jnp.sum(acc, axis=0, keepdims=True)                    # (1, C)
        ss = jnp.sum(acc * acc, axis=0, keepdims=True)             # (1, C)
        mean = s * inv_nl
        var = jnp.maximum(ss * inv_nl - mean * mean, 0.0)
        scale = g_ref[...] * lax.rsqrt(var + EPS)
        bias = b_ref[...] - mean * scale
        return acc * scale + bias

    h = jnp.maximum(bn_fused(conv3(x, w1_ref), g1_ref, b1_ref), 0.0)
    y = bn_fused(conv3(h, w2_ref), g2_ref, b2_ref) + x
    out_ref[...] = jnp.maximum(y, 0.0).astype(out_ref.dtype)


@jax.jit
def basic_block_forward(x_ncl, w1_t, g1, b1, w2_t, g2, b2):
    """x_ncl: (N, C, L) f32 (PyTorch layout). w*_t: (Cout, Cin, 3) PyTorch conv1d weights."""
    N, Ci, L = x_ncl.shape
    Co = w1_t.shape[0]
    if Ci != Co:
        raise ValueError("BasicBlock with stride=1 and no downsample needs inplanes == planes")
    Cp = _round_up(max(Ci, Co), LANE)          # lane-dense channel count
    NL = N * L

    # ---- glue: layout / padding / masks only (no hoisted compute) ----
    x2d = jnp.transpose(x_ncl, (0, 2, 1)).reshape(NL, Ci)          # channels-last, flattened
    x_pad = jnp.pad(x2d, ((0, 0), (0, Cp - Ci)))                   # zero channel padding

    def prep_w(w_t):                                               # (Co, Ci, 3) -> (3, Cp, Cp)
        w = jnp.transpose(w_t, (2, 1, 0))
        w = jnp.pad(w, ((0, 0), (0, Cp - Ci), (0, Cp - Co)))
        return w.astype(jnp.bfloat16)

    w1 = prep_w(w1_t)
    w2 = prep_w(w2_t)
    g1p = jnp.pad(g1, (0, Cp - Co)).reshape(1, Cp)
    b1p = jnp.pad(b1, (0, Cp - Co)).reshape(1, Cp)
    g2p = jnp.pad(g2, (0, Cp - Co)).reshape(1, Cp)
    b2p = jnp.pad(b2, (0, Cp - Co)).reshape(1, Cp)

    pos = jnp.arange(NL, dtype=jnp.int32) % L                      # position within each sample
    m_first = (pos != 0).astype(jnp.float32).reshape(NL, 1)
    m_last = (pos != L - 1).astype(jnp.float32).reshape(NL, 1)

    out2d = pl.pallas_call(
        basic_block_kernel,
        out_shape=jax.ShapeDtypeStruct((NL, Cp), jnp.float32),
        grid=(1,),
        in_specs=[
            pl.BlockSpec((NL, Cp), lambda i: (0, 0)),
            pl.BlockSpec((3, Cp, Cp), lambda i: (0, 0, 0)),
            pl.BlockSpec((1, Cp), lambda i: (0, 0)),
            pl.BlockSpec((1, Cp), lambda i: (0, 0)),
            pl.BlockSpec((3, Cp, Cp), lambda i: (0, 0, 0)),
            pl.BlockSpec((1, Cp), lambda i: (0, 0)),
            pl.BlockSpec((1, Cp), lambda i: (0, 0)),
            pl.BlockSpec((NL, 1), lambda i: (0, 0)),
            pl.BlockSpec((NL, 1), lambda i: (0, 0)),
        ],
        out_specs=pl.BlockSpec((NL, Cp), lambda i: (0, 0)),
        compiler_params=pltpu.CompilerParams(
            dimension_semantics=("arbitrary",),
            vmem_limit_bytes=32 * 1024 * 1024),
    )(x_pad, w1, g1p, b1p, w2, g2p, b2p, m_first, m_last)

    out = out2d[:, :Co].reshape(N, L, Co)                          # drop padded channels
    return jnp.transpose(out, (0, 2, 1))                           # back to (N, C, L)


# ---------------- pure-JAX references (correctness checks only) ----------------
def _conv1d_ref(x_ncl, w_t, mm_dtype):
    return lax.conv_general_dilated(
        x_ncl.astype(mm_dtype), w_t.astype(mm_dtype),
        window_strides=(1,), padding=((1, 1),),
        dimension_numbers=("NCH", "OIH", "NCH"),
        preferred_element_type=jnp.float32)


def _bn_train_ref(x_ncl, gamma, beta):
    m = jnp.mean(x_ncl, axis=(0, 2), keepdims=True)
    v = jnp.mean((x_ncl - m) ** 2, axis=(0, 2), keepdims=True)
    return (x_ncl - m) * lax.rsqrt(v + EPS) * gamma[None, :, None] + beta[None, :, None]


def _ref_forward(x, w1_t, g1, b1, w2_t, g2, b2, mm_dtype=jnp.float32):
    out = jnp.maximum(_bn_train_ref(_conv1d_ref(x, w1_t, mm_dtype), g1, b1), 0.0)
    out = _bn_train_ref(_conv1d_ref(out, w2_t, mm_dtype), g2, b2)
    return jnp.maximum(out + x, 0.0)


if __name__ == "__main__":
    N, C, L = 2, 4, 16                 # inplanes = planes = 4, stride=1, downsample=None
    ks = jax.random.split(jax.random.PRNGKey(0), 12)

    x = jax.random.normal(ks[0], (N, C, L), jnp.float32)
    # block A
    w1a = 0.2 * jax.random.normal(ks[1], (C, C, 3), jnp.float32)
    w2a = 0.2 * jax.random.normal(ks[2], (C, C, 3), jnp.float32)
    g1a = 1.0 + 0.1 * jax.random.normal(ks[3], (C,), jnp.float32)
    b1a = 0.1 * jax.random.normal(ks[4], (C,), jnp.float32)
    g2a = 1.0 + 0.1 * jax.random.normal(ks[5], (C,), jnp.float32)
    b2a = 0.1 * jax.random.normal(ks[6], (C,), jnp.float32)
    # block B (layer1 of ResNetFeatures is a stack of such blocks)
    w1b = 0.2 * jax.random.normal(ks[7], (C, C, 3), jnp.float32)
    w2b = 0.2 * jax.random.normal(ks[8], (C, C, 3), jnp.float32)
    g1b = 1.0 + 0.1 * jax.random.normal(ks[9], (C,), jnp.float32)
    b1b = 0.1 * jax.random.normal(ks[10], (C,), jnp.float32)
    g2b = 1.0 + 0.1 * jax.random.normal(ks[11], (C,), jnp.float32)
    b2b = jnp.zeros((C,), jnp.float32)

    out1 = jax.block_until_ready(basic_block_forward(x, w1a, g1a, b1a, w2a, g2a, b2a))
    out2 = jax.block_until_ready(basic_block_forward(out1, w1b, g1b, b1b, w2b, g2b, b2b))

    # Tight check vs. a reference that also feeds bf16 operands to the matmuls (f32 accum).
    ref1 = _ref_forward(x, w1a, g1a, b1a, w2a, g2a, b2a, mm_dtype=jnp.bfloat16)
    np.testing.assert_allclose(np.asarray(out1), np.asarray(ref1), rtol=5e-3, atol=5e-3)
    ref2 = _ref_forward(ref1, w1b, g1b, b1b, w2b, g2b, b2b, mm_dtype=jnp.bfloat16)
    np.testing.assert_allclose(np.asarray(out2), np.asarray(ref2), rtol=1e-2, atol=1e-2)

    # Loose sanity check vs. the full-f32 reference (bf16 matmul inputs cost ~1e-2 absolute).
    ref1_f32 = _ref_forward(x, w1a, g1a, b1a, w2a, g2a, b2a, mm_dtype=jnp.float32)
    np.testing.assert_allclose(np.asarray(out1), np.asarray(ref1_f32), rtol=5e-2, atol=5e-2)

    print("KERNEL_OK")
</pallas_src>

<mosaic_0001>
module attributes {stable_mosaic.version = 11 : i64} {
  func.func @basic_block_kernel(%arg0: i32, %arg1: memref<32x128xf32, #tpu.memory_space<vmem>>, %arg2: memref<3x128x128xbf16, #tpu.memory_space<vmem>>, %arg3: memref<1x128xf32, #tpu.memory_space<vmem>>, %arg4: memref<1x128xf32, #tpu.memory_space<vmem>>, %arg5: memref<3x128x128xbf16, #tpu.memory_space<vmem>>, %arg6: memref<1x128xf32, #tpu.memory_space<vmem>>, %arg7: memref<1x128xf32, #tpu.memory_space<vmem>>, %arg8: memref<32x1xf32, #tpu.memory_space<vmem>>, %arg9: memref<32x1xf32, #tpu.memory_space<vmem>>, %arg10: memref<32x128xf32, #tpu.memory_space<vmem>>) attributes {dimension_semantics = [#tpu.dimension_semantics<arbitrary>], iteration_bounds = array<i64: 1>, scalar_prefetch = 0 : i64, scratch_operands = 0 : i64, tpu.core_type = #tpu.core_type<tc>, window_params = [{pipeline_mode = #tpu.pipeline_mode<synchronous>, transform_indices = @transform_0, window_bounds = array<i64: 32, 128>}, {pipeline_mode = #tpu.pipeline_mode<synchronous>, transform_indices = @transform_1, window_bounds = array<i64: 3, 128, 128>}, {pipeline_mode = #tpu.pipeline_mode<synchronous>, transform_indices = @transform_2, window_bounds = array<i64: 1, 128>}, {pipeline_mode = #tpu.pipeline_mode<synchronous>, transform_indices = @transform_3, window_bounds = array<i64: 1, 128>}, {pipeline_mode = #tpu.pipeline_mode<synchronous>, transform_indices = @transform_4, window_bounds = array<i64: 3, 128, 128>}, {pipeline_mode = #tpu.pipeline_mode<synchronous>, transform_indices = @transform_5, window_bounds = array<i64: 1, 128>}, {pipeline_mode = #tpu.pipeline_mode<synchronous>, transform_indices = @transform_6, window_bounds = array<i64: 1, 128>}, {pipeline_mode = #tpu.pipeline_mode<synchronous>, transform_indices = @transform_7, window_bounds = array<i64: 32, 1>}, {pipeline_mode = #tpu.pipeline_mode<synchronous>, transform_indices = @transform_8, window_bounds = array<i64: 32, 1>}, {pipeline_mode = #tpu.pipeline_mode<synchronous>, transform_indices = @transform_9, window_bounds = array<i64: 32, 128>}]} {
    %c0 = arith.constant 0 : index
    %c0_0 = arith.constant 0 : index
    %0 = vector.load %arg1[%c0, %c0_0] : memref<32x128xf32, #tpu.memory_space<vmem>>, vector<32x128xf32>
    %c0_1 = arith.constant 0 : index
    %c0_2 = arith.constant 0 : index
    %1 = vector.load %arg8[%c0_1, %c0_2] : memref<32x1xf32, #tpu.memory_space<vmem>>, vector<32x1xf32>
    %c0_3 = arith.constant 0 : index
    %c0_4 = arith.constant 0 : index
    %2 = vector.load %arg9[%c0_3, %c0_4] : memref<32x1xf32, #tpu.memory_space<vmem>>, vector<32x1xf32>
    %3 = arith.truncf %0 : vector<32x128xf32> to vector<32x128xbf16>
    %c1 = arith.constant 1 : index
    %c0_5 = arith.constant 0 : index
    %c0_6 = arith.constant 0 : index
    %4 = vector.load %arg2[%c1, %c0_5, %c0_6] : memref<3x128x128xbf16, #tpu.memory_space<vmem>>, vector<1x128x128xbf16>
    %5 = vector.shape_cast %4 : vector<1x128x128xbf16> to vector<128x128xbf16>
    %cst = arith.constant dense<0.000000e+00> : vector<32x128xf32>
    %6 = tpu.matmul %3, %5, %cst {dimension_numbers = #tpu.dot_dimension_numbers<[1], [0], [0], [1], [0, 0, 1, 1], [], []>} : vector<32x128xbf16>, vector<128x128xbf16>, vector<32x128xf32> -> vector<32x128xf32>
    %c0_7 = arith.constant 0 : index
    %c0_8 = arith.constant 0 : index
    %c0_9 = arith.constant 0 : index
    %7 = vector.load %arg2[%c0_7, %c0_8, %c0_9] : memref<3x128x128xbf16, #tpu.memory_space<vmem>>, vector<1x128x128xbf16>
    %8 = vector.shape_cast %7 : vector<1x128x128xbf16> to vector<128x128xbf16>
    %cst_10 = arith.constant dense<0.000000e+00> : vector<32x128xf32>
    %9 = tpu.matmul %3, %8, %cst_10 {dimension_numbers = #tpu.dot_dimension_numbers<[1], [0], [0], [1], [0, 0, 1, 1], [], []>} : vector<32x128xbf16>, vector<128x128xbf16>, vector<32x128xf32> -> vector<32x128xf32>
    %c1_i32 = arith.constant 1 : i32
    %10 = tpu.dynamic_rotate %9 by %c1_i32 dim 0 : vector<32x128xf32>, i32 -> vector<32x128xf32>
    %11 = vector.broadcast %1 : vector<32x1xf32> to vector<32x128xf32>
    %12 = arith.mulf %10, %11 : vector<32x128xf32>
    %13 = arith.addf %6, %12 : vector<32x128xf32>
    %c2 = arith.constant 2 : index
    %c0_11 = arith.constant 0 : index
    %c0_12 = arith.constant 0 : index
    %14 = vector.load %arg2[%c2, %c0_11, %c0_12] : memref<3x128x128xbf16, #tpu.memory_space<vmem>>, vector<1x128x128xbf16>
    %15 = vector.shape_cast %14 : vector<1x128x128xbf16> to vector<128x128xbf16>
    %cst_13 = arith.constant dense<0.000000e+00> : vector<32x128xf32>
    %16 = tpu.matmul %3, %15, %cst_13 {dimension_numbers = #tpu.dot_dimension_numbers<[1], [0], [0], [1], [0, 0, 1, 1], [], []>} : vector<32x128xbf16>, vector<128x128xbf16>, vector<32x128xf32> -> vector<32x128xf32>
    %c31_i32 = arith.constant 31 : i32
    %17 = tpu.dynamic_rotate %16 by %c31_i32 dim 0 : vector<32x128xf32>, i32 -> vector<32x128xf32>
    %18 = vector.broadcast %2 : vector<32x1xf32> to vector<32x128xf32>
    %19 = arith.mulf %17, %18 : vector<32x128xf32>
    %20 = arith.addf %13, %19 : vector<32x128xf32>
    %cst_14 = arith.constant dense<0.000000e+00> : vector<128xf32>
    %21 = vector.multi_reduction <add>, %20, %cst_14 [0] : vector<32x128xf32> to vector<128xf32>
    %22 = vector.shape_cast %21 : vector<128xf32> to vector<1x128xf32>
    %23 = arith.mulf %20, %20 : vector<32x128xf32>
    %cst_15 = arith.constant dense<0.000000e+00> : vector<128xf32>
    %24 = vector.multi_reduction <add>, %23, %cst_15 [0] : vector<32x128xf32> to vector<128xf32>
    %25 = vector.shape_cast %24 : vector<128xf32> to vector<1x128xf32>
    %cst_16 = arith.constant 3.125000e-02 : f32
    %26 = vector.broadcast %cst_16 : f32 to vector<1x128xf32>
    %27 = arith.mulf %22, %26 : vector<1x128xf32>
    %cst_17 = arith.constant 3.125000e-02 : f32
    %28 = vector.broadcast %cst_17 : f32 to vector<1x128xf32>
    %29 = arith.mulf %25, %28 : vector<1x128xf32>
    %30 = arith.mulf %27, %27 : vector<1x128xf32>
    %31 = arith.subf %29, %30 : vector<1x128xf32>
    %cst_18 = arith.constant 0.000000e+00 : f32
    %32 = vector.broadcast %cst_18 : f32 to vector<1x128xf32>
    %33 = arith.maximumf %31, %32 : vector<1x128xf32>
    %c0_19 = arith.constant 0 : index
    %c0_20 = arith.constant 0 : index
    %34 = vector.load %arg3[%c0_19, %c0_20] : memref<1x128xf32, #tpu.memory_space<vmem>>, vector<1x128xf32>
    %cst_21 = arith.constant 9.99999974E-6 : f32
    %35 = vector.broadcast %cst_21 : f32 to vector<1x128xf32>
    %36 = arith.addf %33, %35 : vector<1x128xf32>
    %37 = math.rsqrt %36 : vector<1x128xf32>
    %38 = arith.mulf %34, %37 : vector<1x128xf32>
    %c0_22 = arith.constant 0 : index
    %c0_23 = arith.constant 0 : index
    %39 = vector.load %arg4[%c0_22, %c0_23] : memref<1x128xf32, #tpu.memory_space<vmem>>, vector<1x128xf32>
    %40 = arith.mulf %27, %38 : vector<1x128xf32>
    %41 = arith.subf %39, %40 : vector<1x128xf32>
    %42 = vector.broadcast %38 : vector<1x128xf32> to vector<32x128xf32>
    %43 = arith.mulf %20, %42 : vector<32x128xf32>
    %44 = vector.broadcast %41 : vector<1x128xf32> to vector<32x128xf32>
    %45 = arith.addf %43, %44 : vector<32x128xf32>
    %cst_24 = arith.constant 0.000000e+00 : f32
    %46 = vector.broadcast %cst_24 : f32 to vector<32x128xf32>
    %47 = arith.maximumf %45, %46 : vector<32x128xf32>
    %48 = arith.truncf %47 : vector<32x128xf32> to vector<32x128xbf16>
    %c1_25 = arith.constant 1 : index
    %c0_26 = arith.constant 0 : index
    %c0_27 = arith.constant 0 : index
    %49 = vector.load %arg5[%c1_25, %c0_26, %c0_27] : memref<3x128x128xbf16, #tpu.memory_space<vmem>>, vector<1x128x128xbf16>
    %50 = vector.shape_cast %49 : vector<1x128x128xbf16> to vector<128x128xbf16>
    %cst_28 = arith.constant dense<0.000000e+00> : vector<32x128xf32>
    %51 = tpu.matmul %48, %50, %cst_28 {dimension_numbers = #tpu.dot_dimension_numbers<[1], [0], [0], [1], [0, 0, 1, 1], [], []>} : vector<32x128xbf16>, vector<128x128xbf16>, vector<32x128xf32> -> vector<32x128xf32>
    %c0_29 = arith.constant 0 : index
    %c0_30 = arith.constant 0 : index
    %c0_31 = arith.constant 0 : index
    %52 = vector.load %arg5[%c0_29, %c0_30, %c0_31] : memref<3x128x128xbf16, #tpu.memory_space<vmem>>, vector<1x128x128xbf16>
    %53 = vector.shape_cast %52 : vector<1x128x128xbf16> to vector<128x128xbf16>
    %cst_32 = arith.constant dense<0.000000e+00> : vector<32x128xf32>
    %54 = tpu.matmul %48, %53, %cst_32 {dimension_numbers = #tpu.dot_dimension_numbers<[1], [0], [0], [1], [0, 0, 1, 1], [], []>} : vector<32x128xbf16>, vector<128x128xbf16>, vector<32x128xf32> -> vector<32x128xf32>
    %c1_i32_33 = arith.constant 1 : i32
    %55 = tpu.dynamic_rotate %54 by %c1_i32_33 dim 0 : vector<32x128xf32>, i32 -> vector<32x128xf32>
    %56 = vector.broadcast %1 : vector<32x1xf32> to vector<32x128xf32>
    %57 = arith.mulf %55, %56 : vector<32x128xf32>
    %58 = arith.addf %51, %57 : vector<32x128xf32>
    %c2_34 = arith.constant 2 : index
    %c0_35 = arith.constant 0 : index
    %c0_36 = arith.constant 0 : index
    %59 = vector.load %arg5[%c2_34, %c0_35, %c0_36] : memref<3x128x128xbf16, #tpu.memory_space<vmem>>, vector<1x128x128xbf16>
    %60 = vector.shape_cast %59 : vector<1x128x128xbf16> to vector<128x128xbf16>
    %cst_37 = arith.constant dense<0.000000e+00> : vector<32x128xf32>
    %61 = tpu.matmul %48, %60, %cst_37 {dimension_numbers = #tpu.dot_dimension_numbers<[1], [0], [0], [1], [0, 0, 1, 1], [], []>} : vector<32x128xbf16>, vector<128x128xbf16>, vector<32x128xf32> -> vector<32x128xf32>
    %c31_i32_38 = arith.constant 31 : i32
    %62 = tpu.dynamic_rotate %61 by %c31_i32_38 dim 0 : vector<32x128xf32>, i32 -> vector<32x128xf32>
    %63 = vector.broadcast %2 : vector<32x1xf32> to vector<32x128xf32>
    %64 = arith.mulf %62, %63 : vector<32x128xf32>
    %65 = arith.addf %58, %64 : vector<32x128xf32>
    %cst_39 = arith.constant dense<0.000000e+00> : vector<128xf32>
    %66 = vector.multi_reduction <add>, %65, %cst_39 [0] : vector<32x128xf32> to vector<128xf32>
    %67 = vector.shape_cast %66 : vector<128xf32> to vector<1x128xf32>
    %68 = arith.mulf %65, %65 : vector<32x128xf32>
    %cst_40 = arith.constant dense<0.000000e+00> : vector<128xf32>
    %69 = vector.multi_reduction <add>, %68, %cst_40 [0] : vector<32x128xf32> to vector<128xf32>
    %70 = vector.shape_cast %69 : vector<128xf32> to vector<1x128xf32>
    %cst_41 = arith.constant 3.125000e-02 : f32
    %71 = vector.broadcast %cst_41 : f32 to vector<1x128xf32>
    %72 = arith.mulf %67, %71 : vector<1x128xf32>
    %cst_42 = arith.constant 3.125000e-02 : f32
    %73 = vector.broadcast %cst_42 : f32 to vector<1x128xf32>
    %74 = arith.mulf %70, %73 : vector<1x128xf32>
    %75 = arith.mulf %72, %72 : vector<1x128xf32>
    %76 = arith.subf %74, %75 : vector<1x128xf32>
    %cst_43 = arith.constant 0.000000e+00 : f32
    %77 = vector.broadcast %cst_43 : f32 to vector<1x128xf32>
    %78 = arith.maximumf %76, %77 : vector<1x128xf32>
    %c0_44 = arith.constant 0 : index
    %c0_45 = arith.constant 0 : index
    %79 = vector.load %arg6[%c0_44, %c0_45] : memref<1x128xf32, #tpu.memory_space<vmem>>, vector<1x128xf32>
    %cst_46 = arith.constant 9.99999974E-6 : f32
    %80 = vector.broadcast %cst_46 : f32 to vector<1x128xf32>
    %81 = arith.addf %78, %80 : vector<1x128xf32>
    %82 = math.rsqrt %81 : vector<1x128xf32>
    %83 = arith.mulf %79, %82 : vector<1x128xf32>
    %c0_47 = arith.constant 0 : index
    %c0_48 = arith.constant 0 : index
    %84 = vector.load %arg7[%c0_47, %c0_48] : memref<1x128xf32, #tpu.memory_space<vmem>>, vector<1x128xf32>
    %85 = arith.mulf %72, %83 : vector<1x128xf32>
    %86 = arith.subf %84, %85 : vector<1x128xf32>
    %87 = vector.broadcast %83 : vector<1x128xf32> to vector<32x128xf32>
    %88 = arith.mulf %65, %87 : vector<32x128xf32>
    %89 = vector.broadcast %86 : vector<1x128xf32> to vector<32x128xf32>
    %90 = arith.addf %88, %89 : vector<32x128xf32>
    %91 = arith.addf %90, %0 : vector<32x128xf32>
    %cst_49 = arith.constant 0.000000e+00 : f32
    %92 = vector.broadcast %cst_49 : f32 to vector<32x128xf32>
    %93 = arith.maximumf %91, %92 : vector<32x128xf32>
    %c0_50 = arith.constant 0 : index
    %c0_51 = arith.constant 0 : index
    %94 = vector.load %arg10[%c0_50, %c0_51] : memref<32x128xf32, #tpu.memory_space<vmem>>, vector<32x128xf32>
    tpu.vector_store %arg10[%c0_50, %c0_51], %93 {strides = array<i32>} : memref<32x128xf32, #tpu.memory_space<vmem>>, vector<32x128xf32>,
    return
  }
  func.func @transform_0(%arg0: i32) -> (i32, i32) {
    %c0_i32 = arith.constant 0 : i32
    %c0_i32_0 = arith.constant 0 : i32
    %c0_i32_1 = arith.constant 0 : i32
    return %c0_i32, %c0_i32_0 : i32, i32
  }
  func.func @transform_1(%arg0: i32) -> (i32, i32, i32) {
    %c0_i32 = arith.constant 0 : i32
    %c0_i32_0 = arith.constant 0 : i32
    %c0_i32_1 = arith.constant 0 : i32
    %c0_i32_2 = arith.constant 0 : i32
    return %c0_i32, %c0_i32_0, %c0_i32_1 : i32, i32, i32
  }
  func.func @transform_2(%arg0: i32) -> (i32, i32) {
    %c0_i32 = arith.constant 0 : i32
    %c0_i32_0 = arith.constant 0 : i32
    %c0_i32_1 = arith.constant 0 : i32
    return %c0_i32, %c0_i32_0 : i32, i32
  }
  func.func @transform_3(%arg0: i32) -> (i32, i32) {
    %c0_i32 = arith.constant 0 : i32
    %c0_i32_0 = arith.constant 0 : i32
    %c0_i32_1 = arith.constant 0 : i32
    return %c0_i32, %c0_i32_0 : i32, i32
  }
  func.func @transform_4(%arg0: i32) -> (i32, i32, i32) {
    %c0_i32 = arith.constant 0 : i32
    %c0_i32_0 = arith.constant 0 : i32
    %c0_i32_1 = arith.constant 0 : i32
    %c0_i32_2 = arith.constant 0 : i32
    return %c0_i32, %c0_i32_0, %c0_i32_1 : i32, i32, i32
  }
  func.func @transform_5(%arg0: i32) -> (i32, i32) {
    %c0_i32 = arith.constant 0 : i32
    %c0_i32_0 = arith.constant 0 : i32
    %c0_i32_1 = arith.constant 0 : i32
    return %c0_i32, %c0_i32_0 : i32, i32
  }
  func.func @transform_6(%arg0: i32) -> (i32, i32) {
    %c0_i32 = arith.constant 0 : i32
    %c0_i32_0 = arith.constant 0 : i32
    %c0_i32_1 = arith.constant 0 : i32
    return %c0_i32, %c0_i32_0 : i32, i32
  }
  func.func @transform_7(%arg0: i32) -> (i32, i32) {
    %c0_i32 = arith.constant 0 : i32
    %c0_i32_0 = arith.constant 0 : i32
    %c0_i32_1 = arith.constant 0 : i32
    return %c0_i32, %c0_i32_0 : i32, i32
  }
  func.func @transform_8(%arg0: i32) -> (i32, i32) {
    %c0_i32 = arith.constant 0 : i32
    %c0_i32_0 = arith.constant 0 : i32
    %c0_i32_1 = arith.constant 0 : i32
    return %c0_i32, %c0_i32_0 : i32, i32
  }
  func.func @transform_9(%arg0: i32) -> (i32, i32) {
    %c0_i32 = arith.constant 0 : i32
    %c0_i32_0 = arith.constant 0 : i32
    %c0_i32_1 = arith.constant 0 : i32
    return %c0_i32, %c0_i32_0 : i32, i32
  }
}

</mosaic_0001>

<bundles_post_ra>
// kernel: basic_block_forward.1
= control target key start
LH: loop header
LB: loop body
LE: loop exit
PB: predicated region body
PF: predicated region fallthrough
CT: control target
= control target key end

     0   :  { %v1306_v1 = vmov 0   ;;  %v181_v57 = vlaneseq  ;;  %s1656_s1 = inlined_call_operand.vmem [shape: bf16[3,128,128], index: 1, kind: input, shape index: {}]   ;;  %s1657_s0 = inlined_call_operand.vmem [shape: f32[32,128], index: 0, kind: input, shape index: {}]   ;;  %s1658_s7 = inlined_call_operand.vmem [shape: f32[32,1], index: 7, kind: input, shape index: {}]   ;;  %s1659_s8 = inlined_call_operand.vmem [shape: f32[32,1], index: 8, kind: input, shape index: {}]   ;;  %s1660_s4 = inlined_call_operand.vmem [shape: bf16[3,128,128], index: 4, kind: input, shape index: {}]   ;;  %s1661_s2 = inlined_call_operand.vmem [shape: f32[1,128], index: 2, kind: input, shape index: {}]   ;;  %s1662_s3 = inlined_call_operand.vmem [shape: f32[1,128], index: 3, kind: input, shape index: {}]   ;;  %s1663_s5 = inlined_call_operand.vmem [shape: f32[1,128], index: 5, kind: input, shape index: {}]   ;;  %s1664_s6 = inlined_call_operand.vmem [shape: f32[1,128], index: 6, kind: input, shape index: {}]   ;;  %s1665_s9 = inlined_call_operand.vmem [shape: f32[32,128], index: 9, kind: output, shape index: {}]  }
   0x1   :  { %v1254_v0 = vld [vmem:[%s1656_s1] sm:$0xff]   ;;  %1253 = vset.pattern.permute.xlu1 %v1306_v1  ;;  %1252 = vset.pattern.permute.xlu0 %v1306_v1  ;;  %v1255_v2 = vld [vmem:[%s1656_s1 + $0x8] sm:$0xff]   ;;  %v1257_v4 = vld [vmem:[%s1656_s1 + $0x10] sm:$0xff]  }
   0x2   :  { %1131 = vmatprep.subr.bf16.mxu0 %v1254_v0  ;;  %v1256_v3 = vld [vmem:[%s1656_s1 + $0x40] sm:$0xff]   ;;  %v1258_v5 = vld [vmem:[%s1656_s1 + $0x48] sm:$0xff]   ;;  %v1260_v6 = vld [vmem:[%s1656_s1 + $0x50] sm:$0xff]   ;;  %v1537_v60 = vshrl.u32 %v181_v57, 7 }
   0x3   :  { %1132 = vmatpush3.bf16.msra.mxu0 %v1254_v0  ;;  %1151 = vmatprep.subr.bf16.mxu1 %v1256_v3  ;;  %v1259_v7 = vld [vmem:[%s1656_s1 + $0x18] sm:$0xff]   ;;  %v1261_v9 = vld [vmem:[%s1656_s1 + $0x20] sm:$0xff]   ;;  %v1395_v12 = vld [vmem:[%s1657_s0 + $0x8] sm:$0xff] }
   0x4   :  { %1133 = vmatprep.subr.bf16.mxu0 %v1255_v2  ;;  %1152 = vmatpush3.bf16.msra.mxu1 %v1256_v3  ;;  %v1262_v8 = vld [vmem:[%s1656_s1 + $0x58] sm:$0xff]   ;;  %v1264_v10 = vld [vmem:[%s1656_s1 + $0x60] sm:$0xff]   ;;  %v1263_v13 = vld [vmem:[%s1656_s1 + $0x28] sm:$0xff]   ;;  %vm183_vm0 = vcmp.lt.s32.totalorder %v1537_v60, 1  ;;  %vm427_vm1 = vcmp.lt.s32.totalorder %v1537_v60, 7 }
   0x5   :  { %1153 = vmatprep.subr.bf16.mxu1 %v1258_v5  ;;  %v1390_v11 = vld [vmem:[%s1657_s0] sm:$0xff]  ;;  %v1266_v15 = vld [vmem:[%s1656_s1 + $0x68] sm:$0xff]   ;;  %v1265_v16 = vld [vmem:[%s1656_s1 + $0x30] sm:$0xff]  }
   0x6   :  { %v45_v14 = vpack.c.bf16 %v1395_v12, %v1390_v11  ;;  %v1268_v17 = vld [vmem:[%s1656_s1 + $0x70] sm:$0xff]   ;;  %v1267_v18 = vld [vmem:[%s1656_s1 + $0x38] sm:$0xff]   ;;  %v37_v21 = vld [vmem:[%s1658_s7] sm:$0xff] }
   0x7   :  { %1134 = vmatpush3.bf16.msra.mxu0 %v1255_v2  ;;  %v39_v19 = vld [vmem:[%s1658_s7 + $0x10] sm:$0xff]  ;;  %v1270_v20 = vld [vmem:[%s1656_s1 + $0x78] sm:$0xff]   ;;  %v41_v24 = vld [vmem:[%s1659_s8] sm:$0xff]  ;;  %190 = vperm.xlu0 %1252, %v37_v21  }
   0x8   :  { %1135 = vmatprep.subr.bf16.mxu0 %v1257_v4  ;;  %1154 = vmatpush3.bf16.msra.mxu1 %v1258_v5  ;;  %v1426_v22 = vld [vmem:[%s1657_s0 + $0x10] sm:$0xff]  ;;  %v1431_v23 = vld [vmem:[%s1657_s0 + $0x18] sm:$0xff]  ;;  %v1269_v25 = vld [vmem:[%s1656_s1 + $0x80] sm:$0xff]  }
   0x9   :  { %1155 = vmatprep.subr.bf16.mxu1 %v1260_v6  ;;  %1147 = vmatprep.mubr.bf16.mxu0 %v45_v14  ;;  %v38_v26 = vld [vmem:[%s1658_s7 + $0x8] sm:$0xff]  ;;  %v46_v27 = vpack.c.bf16 %v1431_v23, %v1426_v22  ;;  %v40_v28 = vld [vmem:[%s1658_s7 + $0x18] sm:$0xff]  ;;  %v1272_v32 = vld [vmem:[%s1656_s1 + $0x90] sm:$0xff]  }
   0xa   :  { %1167 = vmatprep.mubr.bf16.mxu1 %v45_v14  ;;  %200 = vperm.xlu1 %1253, %v39_v19   ;;  %v1271_v29 = vld [vmem:[%s1656_s1 + $0x88] sm:$0xff]   ;;  %v44_v31 = vld [vmem:[%s1659_s8 + $0x18] sm:$0xff]  ;;  %v43_v33 = vld [vmem:[%s1659_s8 + $0x10] sm:$0xff] }
   0xb   :  { %1136 = vmatpush3.bf16.msra.mxu0 %v1257_v4  ;;  %195 = vperm.xlu0 %1252, %v38_v26   ;;  %v42_v30 = vld [vmem:[%s1659_s8 + $0x8] sm:$0xff]  ;;  %v1273_v34 = vld [vmem:[%s1656_s1 + $0x98] sm:$0xff]   ;;  %v1274_v35 = vld [vmem:[%s1656_s1 + $0xa0] sm:$0xff]  }
   0xc   :  { %1137 = vmatprep.subr.bf16.mxu0 %v1259_v7  ;;  %1156 = vmatpush3.bf16.msra.mxu1 %v1260_v6  ;;  %v1275_v36 = vld [vmem:[%s1656_s1 + $0xa8] sm:$0xff]   ;;  %v1276_v37 = vld [vmem:[%s1656_s1 + $0xb0] sm:$0xff]   ;;  %v1277_v38 = vld [vmem:[%s1656_s1 + $0xb8] sm:$0xff]  }
   0xd   :  { %1157 = vmatprep.subr.bf16.mxu1 %v1262_v8  ;;  %v1278_v39 = vld [vmem:[%s1660_s4] sm:$0xff]   ;;  %v1280_v41 = vld [vmem:[%s1660_s4 + $0x8] sm:$0xff]   ;;  %v1282_v43 = vld [vmem:[%s1660_s4 + $0x10] sm:$0xff]  }
   0xe   :  { %434 = vperm.xlu1 %1253, %v41_v24   ;;  %v1279_v40 = vld [vmem:[%s1660_s4 + $0x40] sm:$0xff]   ;;  %v1281_v42 = vld [vmem:[%s1660_s4 + $0x48] sm:$0xff]   ;;  %v1283_v44 = vld [vmem:[%s1660_s4 + $0x50] sm:$0xff]  }
   0xf   :  { %1138 = vmatpush3.bf16.msra.mxu0 %v1259_v7  ;;  %439 = vperm.xlu0 %1252, %v42_v30   ;;  %v1284_v45 = vld [vmem:[%s1660_s4 + $0x18] sm:$0xff]   ;;  %v1286_v47 = vld [vmem:[%s1660_s4 + $0x20] sm:$0xff]   ;;  %v1288_v49 = vld [vmem:[%s1660_s4 + $0x28] sm:$0xff]  }
  0x10   :  { %1139 = vmatprep.subr.bf16.mxu0 %v1261_v9  ;;  %1158 = vmatpush3.bf16.msra.mxu1 %v1262_v8  ;;  %v1285_v46 = vld [vmem:[%s1660_s4 + $0x58] sm:$0xff]   ;;  %v1287_v48 = vld [vmem:[%s1660_s4 + $0x60] sm:$0xff]   ;;  %v1289_v50 = vld [vmem:[%s1660_s4 + $0x68] sm:$0xff]  }
  0x11   :  { %1159 = vmatprep.subr.bf16.mxu1 %v1264_v10  ;;  %v1290_v51 = vld [vmem:[%s1660_s4 + $0x30] sm:$0xff]   ;;  %v1292_v53 = vld [vmem:[%s1660_s4 + $0x38] sm:$0xff]   ;;  %v1528_v55 = vld [vmem:[%s1660_s4 + $0x80] sm:$0xff]  }
  0x12   :  { %205 = vperm.xlu1 %1253, %v40_v28   ;;  %v1291_v52 = vld [vmem:[%s1660_s4 + $0x70] sm:$0xff]   ;;  %v1293_v54 = vld [vmem:[%s1660_s4 + $0x78] sm:$0xff]  }
  0x13   :  { %1140 = vmatpush3.bf16.msra.mxu0 %v1261_v9  ;;  %444 = vperm.xlu0 %1252, %v43_v33  }
  0x14   :  { %1141 = vmatprep.subr.bf16.mxu0 %v1263_v13  ;;  %1160 = vmatpush3.bf16.msra.mxu1 %v1264_v10 }
  0x15   :  { %1161 = vmatprep.subr.bf16.mxu1 %v1266_v15 }
  0x16   :  { %449 = vperm.xlu1 %1253, %v44_v31  }
  0x17   :  { %1142 = vmatpush3.bf16.msra.mxu0 %v1263_v13 }
  0x18   :  { %1143 = vmatprep.subr.bf16.mxu0 %v1265_v16  ;;  %1162 = vmatpush3.bf16.msra.mxu1 %v1266_v15 }
  0x19   :  { %1163 = vmatprep.subr.bf16.mxu1 %v1268_v17 }
  0x1b   :  { %1144 = vmatpush3.bf16.msra.mxu0 %v1265_v16 }
  0x1c   :  { %1145 = vmatprep.subr.bf16.mxu0 %v1267_v18  ;;  %1164 = vmatpush3.bf16.msra.mxu1 %v1268_v17 }
  0x1d   :  { %1165 = vmatprep.subr.bf16.mxu1 %v1270_v20 }
  0x1f   :  { %1146 = vmatpush3.bf16.msra.mxu0 %v1267_v18 }
  0x20   :  { %1171 = vmatprep.subr.bf16.mxu0 %v1269_v25  ;;  %1166 = vmatpush3.bf16.msra.mxu1 %v1270_v20 }
  0x21   :  { %1191 = vmatprep.subr.bf16.mxu1 %v1278_v39 }
  0x22   :  { %1148 = vmatmul.mubr.bf16.vlgmr.msra.gmra.mrb[0].mxu0 %v46_v27 }
  0x23   :  { %1172 = vmatpush3.bf16.msra.mxu0 %v1269_v25  ;;  %1187 = vmatprep.mubr.bf16.mxu0 %v45_v14 }
  0x24   :  { %1173 = vmatprep.subr.bf16.mxu0 %v1271_v29  ;;  %1168 = vmatmul.mubr.bf16.vlgmr.msra.gmra.mrb[0].mxu1 %v46_v27 }
  0x25   :  { %1192 = vmatpush3.bf16.msra.mxu1 %v1278_v39 }
  0x26   :  { %1193 = vmatprep.subr.bf16.mxu1 %v1280_v41 }
  0x27   :  { %1174 = vmatpush3.bf16.msra.mxu0 %v1271_v29 }
  0x28   :  { %1175 = vmatprep.subr.bf16.mxu0 %v1272_v32 }
  0x29   :  { %1194 = vmatpush3.bf16.msra.mxu1 %v1280_v41 }
  0x2a   :  { %1195 = vmatprep.subr.bf16.mxu1 %v1282_v43 }
  0x2b   :  { %1176 = vmatpush3.bf16.msra.mxu0 %v1272_v32 }
  0x2c   :  { %1177 = vmatprep.subr.bf16.mxu0 %v1273_v34 }
  0x2d   :  { %1196 = vmatpush3.bf16.msra.mxu1 %v1282_v43 }
  0x2e   :  { %1197 = vmatprep.subr.bf16.mxu1 %v1284_v45 }
  0x2f   :  { %1178 = vmatpush3.bf16.msra.mxu0 %v1273_v34 }
  0x30   :  { %1179 = vmatprep.subr.bf16.mxu0 %v1274_v35 }
  0x31   :  { %1198 = vmatpush3.bf16.msra.mxu1 %v1284_v45 }
  0x32   :  { %1199 = vmatprep.subr.bf16.mxu1 %v1286_v47 }
  0x33   :  { %1180 = vmatpush3.bf16.msra.mxu0 %v1274_v35 }
  0x34   :  { %1181 = vmatprep.subr.bf16.mxu0 %v1275_v36 }
  0x35   :  { %1200 = vmatpush3.bf16.msra.mxu1 %v1286_v47 }
  0x36   :  { %1201 = vmatprep.subr.bf16.mxu1 %v1288_v49 }
  0x37   :  { %1182 = vmatpush3.bf16.msra.mxu0 %v1275_v36 }
  0x38   :  { %1183 = vmatprep.subr.bf16.mxu0 %v1276_v37 }
  0x39   :  { %1202 = vmatpush3.bf16.msra.mxu1 %v1288_v49 }
  0x3a   :  { %1203 = vmatprep.subr.bf16.mxu1 %v1290_v51 }
  0x3b   :  { %1184 = vmatpush3.bf16.msra.mxu0 %v1276_v37 }
  0x3c   :  { %1185 = vmatprep.subr.bf16.mxu0 %v1277_v38 }
  0x3d   :  { %1204 = vmatpush3.bf16.msra.mxu1 %v1290_v51 }
  0x3e   :  { %1205 = vmatprep.subr.bf16.mxu1 %v1292_v53 }
  0x3f   :  { %1186 = vmatpush3.bf16.msra.mxu0 %v1277_v38 }
  0x40   :  { %1211 = vmatprep.subr.bf16.mxu0 %v1279_v40 }
  0x41   :  { %1206 = vmatpush3.bf16.msra.mxu1 %v1292_v53 }
  0x42   :  { %1188 = vmatmul.mubr.bf16.vlgmr.msra.gmra.mrb[4].mxu0 %v46_v27  ;;  %1231 = vmatprep.subr.bf16.mxu1 %v1528_v55 }
  0x43   :  { %1212 = vmatpush3.bf16.msra.mxu0 %v1279_v40 }
  0x44   :  { %1213 = vmatprep.subr.bf16.mxu0 %v1281_v42 }
  0x47   :  { %1214 = vmatpush3.bf16.msra.mxu0 %v1281_v42 }
  0x48   :  { %1215 = vmatprep.subr.bf16.mxu0 %v1283_v44 }
  0x4b   :  { %1216 = vmatpush3.bf16.msra.mxu0 %v1283_v44 }
  0x4c   :  { %1217 = vmatprep.subr.bf16.mxu0 %v1285_v46 }
  0x4f   :  { %1218 = vmatpush3.bf16.msra.mxu0 %v1285_v46 }
  0x50   :  { %1219 = vmatprep.subr.bf16.mxu0 %v1287_v48 }
  0x53   :  { %1220 = vmatpush3.bf16.msra.mxu0 %v1287_v48 }
  0x54   :  { %1221 = vmatprep.subr.bf16.mxu0 %v1289_v50 }
  0x57   :  { %1222 = vmatpush3.bf16.msra.mxu0 %v1289_v50 }
  0x58   :  { %1223 = vmatprep.subr.bf16.mxu0 %v1291_v52 }
  0x5b   :  { %1224 = vmatpush3.bf16.msra.mxu0 %v1291_v52 }
  0x5c   :  { %1225 = vmatprep.subr.bf16.mxu0 %v1293_v54 }
  0x5f   :  { %1226 = vmatpush3.bf16.msra.mxu0 %v1293_v54 }
  0x86   :  { %v1535_v59 = vpop.permute.xlu0 %190 }
  0x89   :  { %v1531_v56 = vpop.permute.xlu1 %200 }
  0x8a   :  { %v1542_v8 = vpop.permute.xlu0 %195 }
  0x8d   :  { %v1533_v58 = vpop.permute.xlu1 %434 }
  0x8e   :  { %v1556_v27 = vpop.permute.xlu0 %439 }
  0x91   :  { %v1539_v0 = vpop.permute.xlu1 %205 }
  0x92   :  { %v1559_v36 = vpop.permute.xlu0 %444 }
  0x95   :  { %v1561_v37 = vpop.permute.xlu1 %449 }
  0xf5   :  { %v1149_v61 = vpop.f32.mrb[0].mxu0 }
  0xf6   :  { %v179_v62 = vrot.slane %v1149_v61, 7  ;;  %v162_v63 = vpop.f32.mrb[1].mxu0 }
  0xf7   :  { %v177_v1 = vrot.slane %v162_v63, 7  ;;  %v1150_v2 = vpop.f32.mrb[2].mxu0  ;;  %v1169_v3 = vpop.f32.mrb[0].mxu1 }
  0xf8   :  { %v180_v4 = vrot.slane %v1150_v2, 7  ;;  %v165_v5 = vpop.f32.mrb[3].mxu0  ;;  %v294_v6 = vpop.f32.mrb[1].mxu1 }
  0xf9   :  { %v178_v7 = vrot.slane %v165_v5, 7  ;;  %v1170_v9 = vpop.f32.mrb[2].mxu1 }
  0xfa   :  { %v184_v10 = vsel %vm183_vm0, %v179_v62, %v180_v4  ;;  %v187_v13 = vsel %vm183_vm0, %v180_v4, %v177_v1  ;;  %v297_v14 = vpop.f32.mrb[3].mxu1 }
  0xfb   :  { %v211_v15 = vmul.f32 %v1539_v0, %v184_v10  ;;  %v185_v16 = vsel %vm183_vm0, %v178_v7, %v179_v62  ;;  %v186_v17 = vsel %vm183_vm0, %v177_v1, %v178_v7  ;;  %v208_v18 = vmul.f32 %v1535_v59, %v187_v13 }
  0xfc   :  { %v210_v19 = vmul.f32 %v1531_v56, %v185_v16  ;;  %v209_v20 = vmul.f32 %v1542_v8, %v186_v17 }
  0xfd   :  { %v295_v21 = vadd.f32 %v294_v6, %v208_v18  ;;  %v306_v24 = vadd.f32 %v1170_v9, %v211_v15 }
  0xfe   :  { %v303_v25 = vadd.f32 %v1169_v3, %v210_v19  ;;  %v298_v26 = vadd.f32 %v297_v14, %v209_v20 }
 0x115   :  { %v1189_v28 = vpop.f32.mrb[4].mxu0 }
 0x116   :  { %v408_v29 = vpop.f32.mrb[5].mxu0  ;;  %v425_v32 = vrot.slane %v1189_v28, 1 }
 0x117   :  { %v423_v30 = vrot.slane %v408_v29, 1  ;;  %v1190_v31 = vpop.f32.mrb[6].mxu0 }
 0x118   :  { %v426_v33 = vrot.slane %v1190_v31, 1  ;;  %v411_v34 = vpop.f32.mrb[7].mxu0 }
 0x119   :  { %v424_v35 = vrot.slane %v411_v34, 1 }
 0x11a   :  { %v428_v38 = vsel %vm427_vm1, %v425_v32, %v426_v33  ;;  %v431_v39 = vsel %vm427_vm1, %v426_v33, %v423_v30 }
 0x11b   :  { %v454_v40 = vmul.f32 %v1559_v36, %v428_v38  ;;  %v455_v41 = vmul.f32 %v1561_v37, %v431_v39  ;;  %v429_v42 = vsel %vm427_vm1, %v424_v35, %v425_v32  ;;  %v430_v43 = vsel %vm427_vm1, %v423_v30, %v424_v35  ;;  %v491_v30 = vld [vmem:[%s1662_s3] sm:$0x1] }
 0x11c   :  { %v452_v44 = vmul.f32 %v1533_v58, %v430_v43  ;;  %v453_v45 = vmul.f32 %v1556_v27, %v429_v42 }
 0x11d   :  { %v458_v46 = vadd.f32 %v454_v40, %v303_v25  ;;  %v459_v47 = vadd.f32 %v455_v41, %v306_v24  ;;  %v487_v25 = vld [vmem:[%s1661_s2] sm:$0x1] }
 0x11e   :  { %v456_v48 = vadd.f32 %v452_v44, %v295_v21  ;;  %v457_v49 = vadd.f32 %v453_v45, %v298_v26  ;;  %v1579_v26 = vsub.s32 0, %v1537_v60 }
 0x11f   :  { %v471_v53 = vmul.f32 %v458_v46, %v458_v46  ;;  %v472_v61 = vmul.f32 %v459_v47, %v459_v47 }
 0x120   :  { %v460_v50 = vadd.f32 %v457_v49, %v456_v48  ;;  %v469_v51 = vmul.f32 %v456_v48, %v456_v48  ;;  %v470_v52 = vmul.f32 %v457_v49, %v457_v49 }
 0x122   :  { %v461_v54 = vadd.f32 %v460_v50, %v458_v46  ;;  %v473_v57 = vadd.f32 %v470_v52, %v469_v51 }
 0x124   :  { %v462_v62 = vadd.f32 %v461_v54, %v459_v47  ;;  %v474_v63 = vadd.f32 %v473_v57, %v471_v53  ;;  %v1295_v57 = vld [vmem:[%s1660_s4 + $0x88] sm:$0xff]  }
 0x126   :  { %v463_v1 = vrot.slane %v462_v62, 4  ;;  %v475_v2 = vadd.f32 %v474_v63, %v472_v61  ;;  %v1301_v61 = vld [vmem:[%s1660_s4 + $0xb8] sm:$0xff]  }
 0x128   :  { %v464_v3 = vadd.f32 %v463_v1, %v462_v62  ;;  %v476_v4 = vrot.slane %v475_v2, 4 }
 0x12a   :  { %v465_v5 = vrot.slane %v464_v3, 2  ;;  %v477_v6 = vadd.f32 %v476_v4, %v475_v2 }
 0x12c   :  { %v466_v7 = vadd.f32 %v465_v5, %v464_v3  ;;  %v478_v9 = vrot.slane %v477_v6, 2 }
 0x12e   :  { %v467_v10 = vrot.slane %v466_v7, 1  ;;  %v479_v13 = vadd.f32 %v478_v9, %v477_v6 }
 0x130   :  { %v480_v14 = vrot.slane %v479_v13, 1  ;;  %v468_v15 = vadd.f32 %v467_v10, %v466_v7 }
 0x132   :  { %v481_v16 = vadd.f32 %v480_v14, %v479_v13  ;;  %v482_v17 = vmul.f32 0.03125, %v468_v15 }
 0x134   :  { %v483_v18 = vmul.f32 0.03125, %v481_v16  ;;  %v484_v19 = vmul.f32 %v482_v17, %v482_v17 }
 0x136   :  { %v485_v20 = vsub.f32 %v483_v18, %v484_v19 }
 0x138   :  { %v486_v21 = vmax.f32 %v485_v20, 0.0 }
 0x13a   :  { %v488_v24 = vadd.f32 1e-05, %v486_v21 }
 0x13c   :  { %1302 = vrsqrt.f32 %v488_v24 }
 0x146   :  { %v1303_v28 = vpop.eup %1302 }
 0x147   :  { %v490_v29 = vmul.f32 %v1303_v28, %v487_v25 }
 0x149   :  { %v492_v31 = vmul.f32 %v490_v29, %v482_v17  ;;  %v498_v32 = vrot.slane %v490_v29, %v1579_v26 }
 0x14b   :  { %v493_v33 = vsub.f32 %v491_v30, %v492_v31  ;;  %v500_v34 = vmul.f32 %v498_v32, %v456_v48  ;;  %v501_v35 = vmul.f32 %v498_v32, %v457_v49  ;;  %v502_v38 = vmul.f32 %v498_v32, %v458_v46  ;;  %v1296_v46 = vld [vmem:[%s1660_s4 + $0x90] sm:$0xff]   ;;  %v1298_v48 = vld [vmem:[%s1660_s4 + $0xa0] sm:$0xff]  }
 0x14c   :  { %v503_v39 = vmul.f32 %v498_v32, %v459_v47  ;;  %v1297_v47 = vld [vmem:[%s1660_s4 + $0x98] sm:$0xff]   ;;  %v1300_v49 = vld [vmem:[%s1660_s4 + $0xb0] sm:$0xff]  }
 0x14d   :  { %v508_v40 = vrot.slane %v493_v33, %v1579_v26 }
 0x14f   :  { %v510_v41 = vadd.f32 %v508_v40, %v500_v34  ;;  %v511_v42 = vadd.f32 %v508_v40, %v501_v35  ;;  %v512_v43 = vadd.f32 %v508_v40, %v502_v38  ;;  %v513_v44 = vadd.f32 %v508_v40, %v503_v39 }
 0x151   :  { %v514_v45 = vmax.f32 %v510_v41, 0.0  ;;  %v515_v50 = vmax.f32 %v511_v42, 0.0  ;;  %v516_v51 = vmax.f32 %v512_v43, 0.0  ;;  %v517_v52 = vmax.f32 %v513_v44, 0.0 }
 0x153   :  { %v518_v53 = vpack.c.bf16 %v515_v50, %v514_v45  ;;  %v519_v54 = vpack.c.bf16 %v517_v52, %v516_v51 }
 0x155   :  { %1207 = vmatprep.mubr.bf16.mxu1 %v518_v53  ;;  %1227 = vmatprep.mubr.bf16.mxu0 %v518_v53 }
 0x156   :  { %1208 = vmatmul.mubr.bf16.vlgmr.msra.gmra.mrb[4].mxu1 %v519_v54  ;;  %1228 = vmatmul.mubr.bf16.vlgmr.msra.gmra.mrb[8].mxu0 %v519_v54 }
 0x157   :  { %1232 = vmatpush3.bf16.msra.mxu1 %v1528_v55  ;;  %1247 = vmatprep.mubr.bf16.mxu1 %v518_v53  ;;  %v1299_v55 = vld [vmem:[%s1660_s4 + $0xa8] sm:$0xff]  }
 0x158   :  { %1233 = vmatprep.subr.bf16.mxu1 %v1295_v57 }
 0x15b   :  { %1234 = vmatpush3.bf16.msra.mxu1 %v1295_v57 }
 0x15c   :  { %1235 = vmatprep.subr.bf16.mxu1 %v1296_v46 }
 0x15f   :  { %1236 = vmatpush3.bf16.msra.mxu1 %v1296_v46 }
 0x160   :  { %1237 = vmatprep.subr.bf16.mxu1 %v1297_v47 }
 0x163   :  { %1238 = vmatpush3.bf16.msra.mxu1 %v1297_v47 }
 0x164   :  { %1239 = vmatprep.subr.bf16.mxu1 %v1298_v48 }
 0x167   :  { %1240 = vmatpush3.bf16.msra.mxu1 %v1298_v48 }
 0x168   :  { %1241 = vmatprep.subr.bf16.mxu1 %v1299_v55 }
 0x16b   :  { %1242 = vmatpush3.bf16.msra.mxu1 %v1299_v55 }
 0x16c   :  { %1243 = vmatprep.subr.bf16.mxu1 %v1300_v49 }
 0x16f   :  { %1244 = vmatpush3.bf16.msra.mxu1 %v1300_v49 }
 0x170   :  { %1245 = vmatprep.subr.bf16.mxu1 %v1301_v61 }
 0x173   :  { %1246 = vmatpush3.bf16.msra.mxu1 %v1301_v61 }
 0x176   :  { %1248 = vmatmul.mubr.bf16.vlgmr.msra.gmra.mrb[8].mxu1 %v519_v54 }
 0x229   :  { %v1209_v62 = vpop.f32.mrb[4].mxu1  ;;  %v1229_v63 = vpop.f32.mrb[8].mxu0 }
 0x22a   :  { %v635_v1 = vpop.f32.mrb[5].mxu1  ;;  %v744_v2 = vpop.f32.mrb[9].mxu0  ;;  %v652_v6 = vrot.slane %v1209_v62, 7 }
 0x22b   :  { %v650_v3 = vrot.slane %v635_v1, 7  ;;  %v1210_v4 = vpop.f32.mrb[6].mxu1  ;;  %v1230_v5 = vpop.f32.mrb[10].mxu0 }
 0x22c   :  { %v653_v7 = vrot.slane %v1210_v4, 7  ;;  %v638_v9 = vpop.f32.mrb[7].mxu1  ;;  %v747_v10 = vpop.f32.mrb[11].mxu0 }
 0x22d   :  { %v651_v13 = vrot.slane %v638_v9, 7 }
 0x22e   :  { %v657_v14 = vsel %vm183_vm0, %v653_v7, %v650_v3  ;;  %v654_v15 = vsel %vm183_vm0, %v652_v6, %v653_v7 }
 0x22f   :  { %v658_v16 = vmul.f32 %v657_v14, %v1535_v59  ;;  %v661_v17 = vmul.f32 %v654_v15, %v1539_v0  ;;  %v655_v18 = vsel %vm183_vm0, %v651_v13, %v652_v6  ;;  %v656_v19 = vsel %vm183_vm0, %v650_v3, %v651_v13  ;;  %v916_v15 = vld [vmem:[%s1663_s5] sm:$0x1] }
 0x230   :  { %v660_v20 = vmul.f32 %v655_v18, %v1531_v56  ;;  %v659_v21 = vmul.f32 %v656_v19, %v1542_v8  ;;  %v920_v18 = vld [vmem:[%s1664_s6] sm:$0x1] }
 0x231   :  { %v745_v24 = vadd.f32 %v744_v2, %v658_v16  ;;  %v756_v25 = vadd.f32 %v1230_v5, %v661_v17 }
 0x232   :  { %v753_v28 = vadd.f32 %v1229_v63, %v660_v20  ;;  %v748_v29 = vadd.f32 %v747_v10, %v659_v21 }
 0x249   :  { %v1249_v30 = vpop.f32.mrb[8].mxu1 }
 0x24a   :  { %v858_v31 = vpop.f32.mrb[9].mxu1  ;;  %v875_v33 = vrot.slane %v1249_v30, 1 }
 0x24b   :  { %v873_v32 = vrot.slane %v858_v31, 1  ;;  %v1250_v59 = vpop.f32.mrb[10].mxu1 }
 0x24c   :  { %v876_v0 = vrot.slane %v1250_v59, 1  ;;  %v861_v34 = vpop.f32.mrb[11].mxu1 }
 0x24d   :  { %v874_v35 = vrot.slane %v861_v34, 1 }
 0x24e   :  { %v877_v38 = vsel %vm427_vm1, %v875_v33, %v876_v0  ;;  %v880_v56 = vsel %vm427_vm1, %v876_v0, %v873_v32 }
 0x24f   :  { %v883_v8 = vmul.f32 %v877_v38, %v1559_v36  ;;  %v884_v39 = vmul.f32 %v880_v56, %v1561_v37  ;;  %v878_v40 = vsel %vm427_vm1, %v874_v35, %v875_v33  ;;  %v879_v41 = vsel %vm427_vm1, %v873_v32, %v874_v35 }
 0x250   :  { %v881_v42 = vmul.f32 %v879_v41, %v1533_v58  ;;  %v882_v43 = vmul.f32 %v878_v40, %v1556_v27 }
 0x251   :  { %v887_v44 = vadd.f32 %v883_v8, %v753_v28  ;;  %v888_v45 = vadd.f32 %v884_v39, %v756_v25 }
 0x252   :  { %v885_v50 = vadd.f32 %v881_v42, %v745_v24  ;;  %v886_v51 = vadd.f32 %v882_v43, %v748_v29 }
 0x253   :  { %v900_v36 = vmul.f32 %v887_v44, %v887_v44  ;;  %v901_v46 = vmul.f32 %v888_v45, %v888_v45 }
 0x254   :  { %v889_v52 = vadd.f32 %v886_v51, %v885_v50  ;;  %v898_v53 = vmul.f32 %v885_v50, %v885_v50  ;;  %v899_v54 = vmul.f32 %v886_v51, %v886_v51 }
 0x256   :  { %v890_v57 = vadd.f32 %v889_v52, %v887_v44  ;;  %v902_v37 = vadd.f32 %v899_v54, %v898_v53 }
 0x258   :  { %v891_v47 = vadd.f32 %v890_v57, %v888_v45  ;;  %v903_v48 = vadd.f32 %v902_v37, %v900_v36 }
 0x25a   :  { %v892_v55 = vrot.slane %v891_v47, 4  ;;  %v904_v60 = vadd.f32 %v903_v48, %v901_v46 }
 0x25c   :  { %v893_v49 = vadd.f32 %v892_v55, %v891_v47  ;;  %v905_v61 = vrot.slane %v904_v60, 4 }
 0x25e   :  { %v894_v58 = vrot.slane %v893_v49, 2  ;;  %v906_v62 = vadd.f32 %v905_v61, %v904_v60 }
 0x260   :  { %v895_v27 = vadd.f32 %v894_v58, %v893_v49  ;;  %v907_v63 = vrot.slane %v906_v62, 2 }
 0x262   :  { %v896_v1 = vrot.slane %v895_v27, 1  ;;  %v908_v2 = vadd.f32 %v907_v63, %v906_v62 }
 0x264   :  { %v897_v3 = vadd.f32 %v896_v1, %v895_v27  ;;  %v909_v4 = vrot.slane %v908_v2, 1 }
 0x266   :  { %v910_v5 = vadd.f32 %v909_v4, %v908_v2  ;;  %v911_v6 = vmul.f32 0.03125, %v897_v3 }
 0x268   :  { %v912_v7 = vmul.f32 0.03125, %v910_v5  ;;  %v913_v9 = vmul.f32 %v911_v6, %v911_v6 }
 0x26a   :  { %v914_v10 = vsub.f32 %v912_v7, %v913_v9 }
 0x26c   :  { %v915_v13 = vmax.f32 %v914_v10, 0.0 }
 0x26e   :  { %v917_v14 = vadd.f32 1e-05, %v915_v13 }
 0x270   :  { %1304 = vrsqrt.f32 %v917_v14 }
 0x27a   :  { %v1305_v16 = vpop.eup %1304 }
 0x27b   :  { %v919_v17 = vmul.f32 %v1305_v16, %v916_v15 }
 0x27d   :  { %v921_v19 = vmul.f32 %v919_v17, %v911_v6  ;;  %v927_v20 = vrot.slane %v919_v17, %v1579_v26 }
 0x27f   :  { %v922_v21 = vsub.f32 %v920_v18, %v921_v19  ;;  %v929_v24 = vmul.f32 %v927_v20, %v885_v50  ;;  %v930_v25 = vmul.f32 %v927_v20, %v886_v51  ;;  %v931_v28 = vmul.f32 %v927_v20, %v887_v44 }
 0x280   :  { %v932_v29 = vmul.f32 %v927_v20, %v888_v45 }
 0x281   :  { %v937_v30 = vrot.slane %v922_v21, %v1579_v26 }
 0x283   :  { %v939_v31 = vadd.f32 %v937_v30, %v929_v24  ;;  %v940_v32 = vadd.f32 %v937_v30, %v930_v25  ;;  %v941_v59 = vadd.f32 %v937_v30, %v931_v28  ;;  %v942_v33 = vadd.f32 %v937_v30, %v932_v29 }
 0x285   :  { %v943_v0 = vadd.f32 %v939_v31, %v1390_v11  ;;  %v944_v34 = vadd.f32 %v940_v32, %v1395_v12  ;;  %v945_v35 = vadd.f32 %v941_v59, %v1426_v22  ;;  %v946_v38 = vadd.f32 %v942_v33, %v1431_v23 }
 0x287   :  { %v947_v56 = vmax.f32 %v943_v0, 0.0  ;;  %v948_v8 = vmax.f32 %v944_v34, 0.0  ;;  %v949_v39 = vmax.f32 %v945_v35, 0.0  ;;  %v950_v40 = vmax.f32 %v946_v38, 0.0 }
 0x289   :  { %951 = vst [vmem:[%s1665_s9] sm:$0xff] %v947_v56  ;;  %952 = vst [vmem:[%s1665_s9 + $0x8] sm:$0xff] %v948_v8 }
 0x28a   :  { %953 = vst [vmem:[%s1665_s9 + $0x10] sm:$0xff] %v949_v39  ;;  %954 = vst [vmem:[%s1665_s9 + $0x18] sm:$0xff] %v950_v40 }

</bundles_post_ra>
